<compile_context>
chip_gen: v6e
topology: v6e:2x2x1
jax: 0.10.0
libtpu: 0.0.40
codegen_flags: <defaults>
</compile_context>

<pallas_src>
import functools

import jax
import jax.numpy as jnp
from jax.experimental import pallas as pl
from jax.experimental.pallas import tpu as pltpu

_LANE = 128
_SUBLANE = 8


# ------------------------------------------------------------------ kernel --

def _make_fused_kernel(num_layers, min_score, max_score):
    """Build the fused head kernel for a fixed layer count (traced Python loop)."""

    def kernel(*refs):
        # refs = (x, w0, b0, ..., w_{L-1}, b_{L-1}, w_final_pad, b_final_pad, out)
        x_ref = refs[0]
        o_ref = refs[-1]
        param_refs = refs[1:-1]

        h = x_ref[...]  # (TB, Fin) f32
        for i in range(num_layers):
            w = param_refs[2 * i][...]       # (Fin_i, H)
            b = param_refs[2 * i + 1][...]   # (1, H) -> broadcast over batch
            # NOTE: at large hidden dims, cast h/w to bf16 here (keep f32 accumulate)
            # for full MXU throughput; irrelevant at 32x32.
            h = jnp.tanh(jnp.dot(h, w, preferred_element_type=jnp.float32) + b)
            # TODO(synk): nn.Dropout omitted (identity in eval mode); training-mode
            # dropout would need pltpu.prng_seed / pltpu.prng_random_bits masking.

        wf = param_refs[-2][...]  # (H, 128) zero-padded beyond column 2
        bf = param_refs[-1][...]  # (1, 128)
        y = jnp.dot(h, wf, preferred_element_type=jnp.float32) + bf
        s = jax.nn.sigmoid(y)
        o_ref[...] = (s * (max_score - min_score) + min_score).astype(o_ref.dtype)

    return kernel


# --------------------------------------------------------- parameter set-up --

def init_regression_head_params(key, first_dim, hidden_dim, num_layers):
    """Params mirroring the PyTorch module's shapes.

    Hidden layers: nn.Linear default init ~ U(-1/sqrt(fan_in), 1/sqrt(fan_in)).
    Final layer:   xavier_uniform_ weight, zero bias, out_features = 2.
    Weights are stored transposed, i.e. (in_features, out_features).
    The final layer is ALSO stored pre-padded to 128 output lanes (done once here,
    not per forward) so the kernel's output store is lane-dense.
    """
    params = {"hidden": [], "final": None, "final_padded": None}
    in_dim = first_dim
    for _ in range(num_layers):
        key, kw, kb = jax.random.split(key, 3)
        bound = 1.0 / jnp.sqrt(in_dim)
        w = jax.random.uniform(kw, (in_dim, hidden_dim), jnp.float32, -bound, bound)
        b = jax.random.uniform(kb, (1, hidden_dim), jnp.float32, -bound, bound)
        params["hidden"].append((w, b))
        in_dim = hidden_dim

    # final Linear(hidden_dim, 2), xavier_uniform weight, zero bias
    key, kw = jax.random.split(key)
    fan_in, fan_out = hidden_dim, 2
    a = jnp.sqrt(6.0 / (fan_in + fan_out))
    w_final = jax.random.uniform(kw, (hidden_dim, 2), jnp.float32, -a, a)
    b_final = jnp.zeros((1, 2), jnp.float32)
    params["final"] = (w_final, b_final)

    # Pre-pad the final layer to 128 lanes (once, at init).
    w_pad = jnp.zeros((hidden_dim, _LANE), jnp.float32).at[:, :2].set(w_final)
    b_pad = jnp.zeros((1, _LANE), jnp.float32).at[:, :2].set(b_final)
    params["final_padded"] = (w_pad, b_pad)
    return params


# ----------------------------------------------------------------- forward --

def regression_head_forward(params, x, min_score=0.0, max_score=1.0, batch_tile=512):
    """Fused forward: one pallas_call for the entire head, tiled over batch only."""
    B, Fin = x.shape
    hidden = params["hidden"]
    num_layers = len(hidden)
    H = hidden[0][0].shape[1]
    wf_pad, bf_pad = params["final_padded"]
    out_pad_dim = wf_pad.shape[1]  # 128, lane-dense output

    # --- batch tiling: block of TB rows, TB multiple of the 8-row sublane ---
    TB = min(batch_tile, B)
    TB = max(_SUBLANE, (TB // _SUBLANE) * _SUBLANE)
    n_tiles = pl.cdiv(B, TB)
    Bp = n_tiles * TB
    x_p = x if Bp == B else jnp.pad(x, ((0, Bp - B), (0, 0)))

    # --- flatten params; weights/biases stay resident in VMEM (index_map -> 0,0) ---
    flat_params = []
    in_specs = [pl.BlockSpec((TB, Fin), lambda i: (i, 0))]
    for w, b in hidden:
        flat_params += [w, b]
        in_specs += [
            pl.BlockSpec(w.shape, lambda i: (0, 0)),
            pl.BlockSpec(b.shape, lambda i: (0, 0)),
        ]
    flat_params += [wf_pad, bf_pad]
    in_specs += [
        pl.BlockSpec(wf_pad.shape, lambda i: (0, 0)),
        pl.BlockSpec(bf_pad.shape, lambda i: (0, 0)),
    ]

    kernel = _make_fused_kernel(num_layers, float(min_score), float(max_score))

    # --- advisory cost estimate for XLA scheduling ---
    matmul_flops = 2 * Bp * (Fin * H + (num_layers - 1) * H * H + H * out_pad_dim)
    transcendentals = Bp * (num_layers * H + out_pad_dim)  # tanh + sigmoid(exp)
    param_bytes = 4 * sum(int(p.size) for p in flat_params)
    bytes_accessed = 4 * (Bp * Fin + Bp * out_pad_dim) + param_bytes
    cost = pl.CostEstimate(
        flops=int(matmul_flops),
        transcendentals=int(transcendentals),
        bytes_accessed=int(bytes_accessed),
    )

    out_pad = pl.pallas_call(
        kernel,
        out_shape=jax.ShapeDtypeStruct((Bp, out_pad_dim), jnp.float32),
        grid=(n_tiles,),
        in_specs=in_specs,
        out_specs=pl.BlockSpec((TB, out_pad_dim), lambda i: (i, 0)),
        compiler_params=pltpu.CompilerParams(
            dimension_semantics=("parallel",),  # v7x: shard batch tiles over 2 TCs
        ),
        cost_estimate=cost,
    )(x_p, *flat_params)

    # one slice (padded batch rows + padded lanes) after the fused call
    return out_pad[:B, :2]


# reference in plain JAX for a sanity check
def regression_head_reference(params, x, min_score=0.0, max_score=1.0):
    h = x
    for w, b in params["hidden"]:
        h = jnp.tanh(h @ w + b)
    w_f, b_f = params["final"]
    y = h @ w_f + b_f
    return jax.nn.sigmoid(y) * (max_score - min_score) + min_score


# --------------------------------------------------------------------- main --

if __name__ == "__main__":
    key = jax.random.PRNGKey(0)

    B = 8            # batch
    first_dim = 32   # input feature dim
    hidden_dim = 32
    num_layers = 2
    min_score, max_score = 0.0, 1.0

    key, kx, kp = jax.random.split(key, 3)
    x = jax.random.normal(kx, (B, first_dim), jnp.float32)
    params = init_regression_head_params(kp, first_dim, hidden_dim, num_layers)

    out = regression_head_forward(params, x, min_score, max_score)
    out = jax.block_until_ready(out)

    ref = regression_head_reference(params, x, min_score, max_score)
    assert out.shape == (B, 2), out.shape
    assert jnp.allclose(out, ref, atol=1e-5, rtol=1e-5), (out, ref)

    print("KERNEL_OK")
</pallas_src>

<mosaic_0001>
module attributes {stable_mosaic.version = 11 : i64} {
  func.func @kernel(%arg0: i32, %arg1: memref<8x32xf32, #tpu.memory_space<vmem>>, %arg2: memref<32x32xf32, #tpu.memory_space<vmem>>, %arg3: memref<1x32xf32, #tpu.memory_space<vmem>>, %arg4: memref<32x32xf32, #tpu.memory_space<vmem>>, %arg5: memref<1x32xf32, #tpu.memory_space<vmem>>, %arg6: memref<32x128xf32, #tpu.memory_space<vmem>>, %arg7: memref<1x128xf32, #tpu.memory_space<vmem>>, %arg8: memref<8x128xf32, #tpu.memory_space<vmem>>) attributes {dimension_semantics = [#tpu.dimension_semantics<parallel>], iteration_bounds = array<i64: 1>, scalar_prefetch = 0 : i64, scratch_operands = 0 : i64, tpu.core_type = #tpu.core_type<tc>, window_params = [{transform_indices = @transform_0, window_bounds = array<i64: 8, 32>}, {pipeline_mode = #tpu.pipeline_mode<synchronous>, transform_indices = @transform_1, window_bounds = array<i64: 32, 32>}, {pipeline_mode = #tpu.pipeline_mode<synchronous>, transform_indices = @transform_2, window_bounds = array<i64: 1, 32>}, {pipeline_mode = #tpu.pipeline_mode<synchronous>, transform_indices = @transform_3, window_bounds = array<i64: 32, 32>}, {pipeline_mode = #tpu.pipeline_mode<synchronous>, transform_indices = @transform_4, window_bounds = array<i64: 1, 32>}, {pipeline_mode = #tpu.pipeline_mode<synchronous>, transform_indices = @transform_5, window_bounds = array<i64: 32, 128>}, {pipeline_mode = #tpu.pipeline_mode<synchronous>, transform_indices = @transform_6, window_bounds = array<i64: 1, 128>}, {transform_indices = @transform_7, window_bounds = array<i64: 8, 128>}]} {
    %c0 = arith.constant 0 : index
    %c0_0 = arith.constant 0 : index
    %0 = vector.load %arg1[%c0, %c0_0] : memref<8x32xf32, #tpu.memory_space<vmem>>, vector<8x32xf32>
    %c0_1 = arith.constant 0 : index
    %c0_2 = arith.constant 0 : index
    %1 = vector.load %arg2[%c0_1, %c0_2] : memref<32x32xf32, #tpu.memory_space<vmem>>, vector<32x32xf32>
    %c0_3 = arith.constant 0 : index
    %c0_4 = arith.constant 0 : index
    %2 = vector.load %arg3[%c0_3, %c0_4] : memref<1x32xf32, #tpu.memory_space<vmem>>, vector<1x32xf32>
    %cst = arith.constant dense<0.000000e+00> : vector<8x32xf32>
    %3 = tpu.matmul %0, %1, %cst {dimension_numbers = #tpu.dot_dimension_numbers<[1], [0], [0], [1], [0, 0, 1, 1], [], []>} : vector<8x32xf32>, vector<32x32xf32>, vector<8x32xf32> -> vector<8x32xf32>
    %4 = vector.broadcast %2 : vector<1x32xf32> to vector<8x32xf32>
    %5 = arith.addf %3, %4 : vector<8x32xf32>
    %6 = math.tanh %5 : vector<8x32xf32>
    %c0_5 = arith.constant 0 : index
    %c0_6 = arith.constant 0 : index
    %7 = vector.load %arg4[%c0_5, %c0_6] : memref<32x32xf32, #tpu.memory_space<vmem>>, vector<32x32xf32>
    %c0_7 = arith.constant 0 : index
    %c0_8 = arith.constant 0 : index
    %8 = vector.load %arg5[%c0_7, %c0_8] : memref<1x32xf32, #tpu.memory_space<vmem>>, vector<1x32xf32>
    %cst_9 = arith.constant dense<0.000000e+00> : vector<8x32xf32>
    %9 = tpu.matmul %6, %7, %cst_9 {dimension_numbers = #tpu.dot_dimension_numbers<[1], [0], [0], [1], [0, 0, 1, 1], [], []>} : vector<8x32xf32>, vector<32x32xf32>, vector<8x32xf32> -> vector<8x32xf32>
    %10 = vector.broadcast %8 : vector<1x32xf32> to vector<8x32xf32>
    %11 = arith.addf %9, %10 : vector<8x32xf32>
    %12 = math.tanh %11 : vector<8x32xf32>
    %c0_10 = arith.constant 0 : index
    %c0_11 = arith.constant 0 : index
    %13 = vector.load %arg6[%c0_10, %c0_11] : memref<32x128xf32, #tpu.memory_space<vmem>>, vector<32x128xf32>
    %c0_12 = arith.constant 0 : index
    %c0_13 = arith.constant 0 : index
    %14 = vector.load %arg7[%c0_12, %c0_13] : memref<1x128xf32, #tpu.memory_space<vmem>>, vector<1x128xf32>
    %cst_14 = arith.constant dense<0.000000e+00> : vector<8x128xf32>
    %15 = tpu.matmul %12, %13, %cst_14 {dimension_numbers = #tpu.dot_dimension_numbers<[1], [0], [0], [1], [0, 0, 1, 1], [], []>} : vector<8x32xf32>, vector<32x128xf32>, vector<8x128xf32> -> vector<8x128xf32>
    %16 = vector.broadcast %14 : vector<1x128xf32> to vector<8x128xf32>
    %17 = arith.addf %15, %16 : vector<8x128xf32>
    %18 = arith.negf %17 : vector<8x128xf32>
    %19 = math.exp %18 : vector<8x128xf32>
    %cst_15 = arith.constant 1.000000e+00 : f32
    %20 = vector.broadcast %cst_15 : f32 to vector<8x128xf32>
    %21 = arith.addf %20, %19 : vector<8x128xf32>
    %22 = arith.divf %20, %21 : vector<8x128xf32>
    %cst_16 = arith.constant 1.000000e+00 : f32
    %23 = vector.broadcast %cst_16 : f32 to vector<8x128xf32>
    %24 = arith.mulf %22, %23 : vector<8x128xf32>
    %cst_17 = arith.constant 0.000000e+00 : f32
    %25 = vector.broadcast %cst_17 : f32 to vector<8x128xf32>
    %26 = arith.addf %24, %25 : vector<8x128xf32>
    %c0_18 = arith.constant 0 : index
    %c0_19 = arith.constant 0 : index
    %27 = vector.load %arg8[%c0_18, %c0_19] : memref<8x128xf32, #tpu.memory_space<vmem>>, vector<8x128xf32>
    tpu.vector_store %arg8[%c0_18, %c0_19], %26 {strides = array<i32>} : memref<8x128xf32, #tpu.memory_space<vmem>>, vector<8x128xf32>,
    return
  }
  func.func @transform_0(%arg0: i32) -> (i32, i32) {
    %c0_i32 = arith.constant 0 : i32
    %c0_i32_0 = arith.constant 0 : i32
    return %arg0, %c0_i32 : i32, i32
  }
  func.func @transform_1(%arg0: i32) -> (i32, i32) {
    %c0_i32 = arith.constant 0 : i32
    %c0_i32_0 = arith.constant 0 : i32
    %c0_i32_1 = arith.constant 0 : i32
    return %c0_i32, %c0_i32_0 : i32, i32
  }
  func.func @transform_2(%arg0: i32) -> (i32, i32) {
    %c0_i32 = arith.constant 0 : i32
    %c0_i32_0 = arith.constant 0 : i32
    %c0_i32_1 = arith.constant 0 : i32
    return %c0_i32, %c0_i32_0 : i32, i32
  }
  func.func @transform_3(%arg0: i32) -> (i32, i32) {
    %c0_i32 = arith.constant 0 : i32
    %c0_i32_0 = arith.constant 0 : i32
    %c0_i32_1 = arith.constant 0 : i32
    return %c0_i32, %c0_i32_0 : i32, i32
  }
  func.func @transform_4(%arg0: i32) -> (i32, i32) {
    %c0_i32 = arith.constant 0 : i32
    %c0_i32_0 = arith.constant 0 : i32
    %c0_i32_1 = arith.constant 0 : i32
    return %c0_i32, %c0_i32_0 : i32, i32
  }
  func.func @transform_5(%arg0: i32) -> (i32, i32) {
    %c0_i32 = arith.constant 0 : i32
    %c0_i32_0 = arith.constant 0 : i32
    %c0_i32_1 = arith.constant 0 : i32
    return %c0_i32, %c0_i32_0 : i32, i32
  }
  func.func @transform_6(%arg0: i32) -> (i32, i32) {
    %c0_i32 = arith.constant 0 : i32
    %c0_i32_0 = arith.constant 0 : i32
    %c0_i32_1 = arith.constant 0 : i32
    return %c0_i32, %c0_i32_0 : i32, i32
  }
  func.func @transform_7(%arg0: i32) -> (i32, i32) {
    %c0_i32 = arith.constant 0 : i32
    %c0_i32_0 = arith.constant 0 : i32
    return %arg0, %c0_i32 : i32, i32
  }
}

</mosaic_0001>

<bundles_post_ra>
// kernel: tpu_custom_call.1
= control target key start
LH: loop header
LB: loop body
LE: loop exit
PB: predicated region body
PF: predicated region fallthrough
CT: control target
= control target key end

     0   :  { %12 = vsyncpa [#allocation3], 0  ;;  %s629_s0 = inlined_call_operand.hbm [shape: f32[8,32], index: 0, kind: input, shape index: {}]   ;;  %s630_s1 = inlined_call_operand.hbm [shape: f32[32,32], index: 1, kind: input, shape index: {}]   ;;  %s631_s2 = inlined_call_operand.vmem [shape: f32[1,32], index: 2, kind: input, shape index: {}]   ;;  %s632_s3 = inlined_call_operand.hbm [shape: f32[32,32], index: 3, kind: input, shape index: {}]   ;;  %s633_s4 = inlined_call_operand.vmem [shape: f32[1,32], index: 4, kind: input, shape index: {}]   ;;  %s634_s5 = inlined_call_operand.hbm [shape: f32[32,128], index: 5, kind: input, shape index: {}]   ;;  %s635_s6 = inlined_call_operand.vmem [shape: f32[1,128], index: 6, kind: input, shape index: {}]   ;;  %s636_s7 = inlined_call_operand.hbm [shape: f32[8,128], index: 7, kind: output, shape index: {}]  }
   0x1   :  { %13 = vsyncpa [#allocation6], 0 }
   0x2   :  { %14 = vsyncpa [#allocation9], 0 }
   0x3   :  { %15 = vsyncpa [#allocation4], 0  ;;  %s541_s24 = smov [#allocation5]  }
   0x4   :  { %s31_s25 = sshll.u32 %s541_s24, 4  ;;  %s32_s25 = int_to_ptr.vmem [resolvable:$true] %s31_s25 }
   0x5   :  { %s441_s26 = scalar_lea.vmem %s32_s25, 512  ;;  %p446_p1 = scmp.lt.s32.totalorder %s32_s25, %s32_s25 }
   0x6   :  { %p442_p0 = scmp.ne.s32.totalorder %s32_s25, %s441_s26  ;;  %p447_p2 = scmp.lt.s32.totalorder %s441_s26, %s441_s26 }
   0x8   :  { %p448_p3 = por %p447_p2, %p446_p1 }
   0xa   :  { %p449_p4 = pnand %p448_p3, %p442_p0 }
   0xc   :  { %452 = shalt.err (!%p449_p4)
}
   0xd   :  { %s542_s27 = smov 128   ;;  %s543_s28 = smov 8  }
   0xe   :  { %37 = dma.hbm_to_vmem [thread:$0]  %s630_s1, 512, %s32_s25, [#allocation6], %s542_s27, %s542_s27, %s543_s28  }
   0xf   :  { %s544_s8 = smov [#allocation2]   ;;  %s545_s10 = smov [#allocation7]  }
  0x10   :  { %s22_s9 = sshll.u32 %s544_s8, 4  ;;  %s45_s11 = sshll.u32 %s545_s10, 4  ;;  %s23_s9 = int_to_ptr.vmem [resolvable:$true] %s22_s9  ;;  %s46_s11 = int_to_ptr.vmem [resolvable:$true] %s45_s11 }
  0x11   :  { %s461_s12 = scalar_lea.vmem %s23_s9, 128  ;;  %p466_p6 = scmp.lt.s32.totalorder %s23_s9, %s23_s9 }
  0x12   :  { %p462_p5 = scmp.ne.s32.totalorder %s23_s9, %s461_s12  ;;  %p467_p7 = scmp.lt.s32.totalorder %s461_s12, %s461_s12 }
  0x14   :  { %p468_p8 = por %p467_p7, %p466_p6 }
  0x16   :  { %p469_p9 = pnand %p468_p8, %p462_p5 }
  0x18   :  { %472 = shalt.err (!%p469_p9)
}
  0x19   :  { %25 = dma.hbm_to_vmem [thread:$0]  %s629_s0, 128, %s23_s9, [#allocation3]  }
  0x1a   :  { %s481_s15 = scalar_lea.vmem %s46_s11, 512  ;;  %p486_p11 = scmp.lt.s32.totalorder %s46_s11, %s46_s11 }
  0x1b   :  { %p482_p10 = scmp.ne.s32.totalorder %s46_s11, %s481_s15  ;;  %p487_p12 = scmp.lt.s32.totalorder %s481_s15, %s481_s15 }
  0x1d   :  { %p488_p13 = por %p487_p12, %p486_p11 }
  0x1f   :  { %p489_p0 = pnand %p488_p13, %p482_p10 }
  0x21   :  { %492 = shalt.err (!%p489_p0)
}
  0x22   :  { %51 = dma.hbm_to_vmem [thread:$0]  %s632_s3, 512, %s46_s11, [#allocation6], %s542_s27, %s542_s27, %s543_s28  }
  0x23   :  { %s546_s17 = smov [#allocation8]  }
  0x24   :  { %s59_s18 = sshll.u32 %s546_s17, 4  ;;  %s60_s18 = int_to_ptr.vmem [resolvable:$true] %s59_s18 }
  0x25   :  { %s501_s19 = scalar_lea.vmem %s60_s18, 512  ;;  %p506_p2 = scmp.lt.s32.totalorder %s60_s18, %s60_s18 }
  0x26   :  { %p502_p1 = scmp.ne.s32.totalorder %s60_s18, %s501_s19  ;;  %p507_p3 = scmp.lt.s32.totalorder %s501_s19, %s501_s19 }
  0x28   :  { %p508_p4 = por %p507_p3, %p506_p2 }
  0x2a   :  { %p509_p5 = pnand %p508_p4, %p502_p1 }
  0x2c   :  { %512 = shalt.err (!%p509_p5)
}
  0x2d   :  { %65 = dma.hbm_to_vmem [thread:$0]  %s634_s5, 512, %s60_s18, [#allocation9], %s542_s27, %s542_s27, %s543_s28  }
  0x2e   :  { %533 = dma.done.wait [#allocation3], 128  }
  0x2f   :  { %534 = vsyncadd [#allocation3], 4294967168 }
  0x30   :  { %535 = dma.done.wait [#allocation6], 1024  }
  0x31   :  { %536 = vsyncadd [#allocation6], 4294966272 }
  0x32   :  { %537 = dma.done.wait [#allocation9], 512  }
  0x33   :  { %538 = vsyncadd [#allocation9], 4294966784  ;;  %v547_v0 = vmov 0.0   ;;  %vm548_vm0 = vmmov 0   ;;  %v84_v1 = vld [vmem:[#allocation5 + $0x18] sm:$0xff]  ;;  %v83_v2 = vld [vmem:[#allocation5 + $0x10] sm:$0xff] }
  0x34   :  { %383 = vmatprep.subr.mxu0 %v547_v0  ;;  %391 = vmatprep.mubr.msk.f32.mxu0 %vm548_vm0, %v547_v0  ;;  %v82_v3 = vld [vmem:[#allocation5 + $0x8] sm:$0xff]  ;;  %v81_v4 = vld [vmem:[#allocation5] sm:$0xff]  ;;  %v80_v5 = vld [vmem:[#allocation2] sm:$0xff]  ;;  %vm92_vm1 = vcmask 261120  }
  0x35   :  { %394 = vmatprep.subr.mxu1 %v547_v0  ;;  %402 = vmatprep.mubr.msk.f32.mxu1 %vm548_vm0, %v547_v0  ;;  %v170_v6 = vld [vmem:[#allocation7 + $0x18] sm:$0xff]  ;;  %v169_v7 = vld [vmem:[#allocation7 + $0x10] sm:$0xff]  ;;  %v168_v8 = vld [vmem:[#allocation7 + $0x8] sm:$0xff] }
  0x36   :  { %384 = vmatpush3.msra.mxu0 %v84_v1  ;;  %395 = vmatpush3.msra.mxu1 %v170_v6  ;;  %v167_v9 = vld [vmem:[#allocation7] sm:$0xff]  ;;  %v361_v10 = vld [vmem:[%s631_s2] ss:$0 sm:$0xff]  ;;  %v254_v16 = vld [vmem:[#allocation8 + $0x10] sm:$0xff] }
  0x37   :  { %385 = vmatprep.subr.mxu0 %v547_v0  ;;  %396 = vmatprep.subr.mxu1 %v547_v0  ;;  %v255_v15 = vld [vmem:[#allocation8 + $0x18] sm:$0xff]  ;;  %v253_v17 = vld [vmem:[#allocation8 + $0x8] sm:$0xff]  ;;  %v252_v18 = vld [vmem:[#allocation8] sm:$0xff] }
  0x38   :  { %386 = vmatpush3.msra.mxu0 %v83_v2  ;;  %397 = vmatpush3.msra.mxu1 %v169_v7  ;;  %v363_v19 = vld [vmem:[%s633_s4] ss:$0 sm:$0xff]  ;;  %s549_s4 = smov [#allocation10]  }
  0x39   :  { %387 = vmatprep.subr.mxu0 %v547_v0  ;;  %398 = vmatprep.subr.mxu1 %v547_v0  ;;  %v365_v24 = vld [vmem:[%s635_s6] ss:$0 sm:$0xff]  ;;  %s350_s24 = sshll.u32 %s549_s4, 4  ;;  %s351_s24 = int_to_ptr.vmem [resolvable:$true] %s350_s24 }
  0x3a   :  { %388 = vmatpush3.msra.mxu0 %v82_v3  ;;  %399 = vmatpush3.msra.mxu1 %v168_v8  ;;  %s513_s25 = scalar_lea.vmem %s351_s24, 128  ;;  %p518_p7 = scmp.lt.s32.totalorder %s351_s24, %s351_s24 }
  0x3b   :  { %389 = vmatprep.subr.mxu0 %v547_v0  ;;  %400 = vmatprep.subr.mxu1 %v547_v0  ;;  %p514_p6 = scmp.ne.s32.totalorder %s351_s24, %s513_s25  ;;  %p519_p8 = scmp.lt.s32.totalorder %s513_s25, %s513_s25 }
  0x3c   :  { %390 = vmatpush3.msra.mxu0 %v81_v4  ;;  %401 = vmatpush3.msra.mxu1 %v167_v9 }
  0x3d   :  { %392 = vmatmul.mubr.msk.f32.vlgmr.msra.gmra.mxu0 %vm92_vm1, %v80_v5  ;;  %405 = vmatprep.subr.mxu0 %v547_v0  ;;  %p520_p9 = por %p519_p8, %p518_p7 }
  0x3e   :  { %413 = vmatprep.mubr.msk.f32.mxu0 %vm548_vm0, %v547_v0  ;;  %406 = vmatpush3.msra.mxu0 %v255_v15 }
  0x3f   :  { %407 = vmatprep.subr.mxu0 %v547_v0  ;;  %p521_p10 = pnand %p520_p9, %p514_p6 }
  0x40   :  { %408 = vmatpush3.msra.mxu0 %v254_v16 }
  0x41   :  { %409 = vmatprep.subr.mxu0 %v547_v0 }
  0x42   :  { %410 = vmatpush3.msra.mxu0 %v253_v17 }
  0x43   :  { %411 = vmatprep.subr.mxu0 %v547_v0 }
  0x44   :  { %412 = vmatpush3.msra.mxu0 %v252_v18 }
  0xfd   :  { %v162_v11 = vpop.f32.mrf.mxu0 }
  0xfe   :  { %v163_v12 = vadd.f32 %v361_v10, %v162_v11 }
  0xff   :  { %v393_v13 = vpop.f32.mrf.mxu0 }
 0x100   :  { %425 = vtanh.f32 %v163_v12 }
 0x10d   :  { %v426_v14 = vpop.eup %425 }
 0x10e   :  { %403 = vmatmul.mubr.msk.f32.vlgmr.msra.gmra.mxu1 %vm92_vm1, %v426_v14 }
 0x1ce   :  { %v247_v20 = vpop.f32.mrf.mxu1 }
 0x1cf   :  { %v248_v21 = vadd.f32 %v363_v19, %v247_v20 }
 0x1d0   :  { %v404_v22 = vpop.f32.mrf.mxu1 }
 0x1d1   :  { %427 = vtanh.f32 %v248_v21 }
 0x1de   :  { %v428_v23 = vpop.eup %427 }
 0x1df   :  { %414 = vmatmul.mubr.msk.f32.vlgmr.msra.gmra.mxu0 %vm92_vm1, %v428_v23 }
 0x29f   :  { %v332_v25 = vpop.f32.mrf.mxu0 }
 0x2a0   :  { %v333_v26 = vadd.f32 %v365_v24, %v332_v25 }
 0x2a1   :  { %v415_v27 = vpop.f32.mrf.mxu0 }
 0x2a2   :  { %v367_v28 = vmul.f32 -1.442695, %v333_v26 }
 0x2a4   :  { %429 = vpow2.f32 %v367_v28 }
 0x2b1   :  { %v430_v29 = vpop.eup %429 }
 0x2b2   :  { %v339_v30 = vadd.f32 1.0, %v430_v29 }
 0x2b4   :  { %431 = vrcp.f32 %v339_v30 }
 0x2c1   :  { %v432_v31 = vpop.eup %431 }
 0x2c2   :  { %343 = vst [vmem:[#allocation10] sm:$0xff] %v432_v31 }
 0x2c3   :  { %524 = shalt.err (!%p521_p10)
}
 0x2c4   :  { %353 = dma.vmem_to_hbm [thread:$0]  %s351_s24, 128, %s636_s7, [#allocation4]  }
 0x2c5   :  { %539 = dma.done.wait [#allocation4], 128  }
 0x2c6   :  { %540 = vsyncadd [#allocation4], 4294967168 }
 0x2c7   :  { %357 = vsyncpa [#allocation3], 1 }
 0x2c8   :  { %358 = vsyncpa [#allocation6], 1 }
 0x2c9   :  { %359 = vsyncpa [#allocation9], 1 }
 0x2ca   :  { %360 = vsyncpa [#allocation4], 1 }

</bundles_post_ra>
